<compile_context>
chip_gen: v6e
topology: v6e:2x2x1
jax: 0.10.0
libtpu: 0.0.40
codegen_flags: <defaults>
</compile_context>

<pallas_src>
import functools

import jax
import jax.numpy as jnp
from jax.experimental import pallas as pl
from jax.experimental.pallas import tpu as pltpu


# ----------------------------------------------------------------------------
# Kernels
# ----------------------------------------------------------------------------

def _layernorm_kernel(x_ref, g_ref, b_ref, o_ref, *, eps, d):
    # x_ref: (TR, D) row tile; g_ref/b_ref: (1, D) params broadcast over rows.
    x = x_ref[...].astype(jnp.float32)
    mean = jnp.mean(x, axis=-1, keepdims=True)
    xc = x - mean
    # torch.std default is unbiased (divide by D-1); eps is added to std, not var.
    var = jnp.sum(xc * xc, axis=-1, keepdims=True) * jnp.float32(1.0 / (d - 1))
    std = jnp.sqrt(var)
    g = g_ref[...].astype(jnp.float32)
    b = b_ref[...].astype(jnp.float32)
    y = g * xc / (std + jnp.float32(eps)) + b
    o_ref[...] = y.astype(o_ref.dtype)


def _residual_add_kernel(x_ref, s_ref, o_ref):
    # Eval path: out = x + sublayer_out  (dropout is identity).
    y = x_ref[...].astype(jnp.float32) + s_ref[...].astype(jnp.float32)
    o_ref[...] = y.astype(o_ref.dtype)


def _residual_add_dropout_kernel(x_ref, s_ref, m_ref, o_ref, *, inv_keep):
    # Training path: out = x + inverted_dropout(sublayer_out).
    # m_ref holds the keep mask as {0, 1} in the activation dtype; the
    # 1/(1-p) rescale happens here so the kernel does the full dropout math.
    x = x_ref[...].astype(jnp.float32)
    s = s_ref[...].astype(jnp.float32)
    m = m_ref[...].astype(jnp.float32)
    o_ref[...] = (x + s * (m * jnp.float32(inv_keep))).astype(o_ref.dtype)


# ----------------------------------------------------------------------------
# Tiling helper: pick a row tile that is a multiple of 8 sublanes and keeps
# double-buffered tiles well under the default scoped-VMEM limit on all gens
# (16 MiB v5e, 32 MiB v6e/v7x; v7x physical VMEM is only 64 MiB).
# ----------------------------------------------------------------------------

def _row_tile(rows, row_bytes, budget_bytes=2 << 20):
    max_rows = max(8, budget_bytes // max(row_bytes, 1))
    if rows <= max_rows:
        return rows                      # full extent -> always layout-legal
    return max(8, (max_rows // 8) * 8)   # multiple of 8 sublanes


# ----------------------------------------------------------------------------
# Wrappers around pallas_call
# ----------------------------------------------------------------------------

def layer_norm(x, gamma, beta, eps):
    orig_shape = x.shape
    d = orig_shape[-1]
    rows = x.size // d
    x2 = x.reshape(rows, d)
    g2 = gamma.reshape(1, d).astype(x.dtype)
    b2 = beta.reshape(1, d).astype(x.dtype)

    tr = _row_tile(rows, d * 4)  # f32 compute footprint per row
    grid = (pl.cdiv(rows, tr),)

    out = pl.pallas_call(
        functools.partial(_layernorm_kernel, eps=eps, d=d),
        out_shape=jax.ShapeDtypeStruct((rows, d), x.dtype),
        grid=grid,
        in_specs=[
            pl.BlockSpec((tr, d), lambda i: (i, 0)),   # x row tile
            pl.BlockSpec((1, d), lambda i: (0, 0)),    # gamma (same block every step)
            pl.BlockSpec((1, d), lambda i: (0, 0)),    # beta
        ],
        out_specs=pl.BlockSpec((tr, d), lambda i: (i, 0)),
        compiler_params=pltpu.CompilerParams(dimension_semantics=("parallel",)),
    )(x2, g2, b2)
    return out.reshape(orig_shape)


def residual_add_dropout(x, sub_out, p, training, seed):
    assert x.shape == sub_out.shape
    orig_shape = x.shape
    n = x.size

    # Lane-dense layout for the purely elementwise kernel: flatten to 128-wide
    # lanes when possible (avoids masked partial stores for narrow d_model).
    if n % 128 == 0:
        cols = 128
        rows = n // 128
    else:
        cols = orig_shape[-1]
        rows = n // cols

    x2 = x.reshape(rows, cols)
    s2 = sub_out.reshape(rows, cols).astype(x.dtype)

    tr = _row_tile(rows, cols * 4)
    grid = (pl.cdiv(rows, tr),)

    apply_dropout = training and p > 0.0
    if apply_dropout:
        inv_keep = 1.0 / (1.0 - p)
        # Keep-mask generated in plain JAX (portable); fused apply stays in the kernel.
        key = jax.random.PRNGKey(seed)
        mask = jax.random.bernoulli(key, 1.0 - p, (rows, cols)).astype(x.dtype)
        kernel = functools.partial(_residual_add_dropout_kernel, inv_keep=inv_keep)
        in_specs = [
            pl.BlockSpec((tr, cols), lambda i: (i, 0)),  # residual x
            pl.BlockSpec((tr, cols), lambda i: (i, 0)),  # sublayer output
            pl.BlockSpec((tr, cols), lambda i: (i, 0)),  # keep mask {0,1}
        ]
        args = (x2, s2, mask)
    else:
        kernel = _residual_add_kernel
        in_specs = [
            pl.BlockSpec((tr, cols), lambda i: (i, 0)),
            pl.BlockSpec((tr, cols), lambda i: (i, 0)),
        ]
        args = (x2, s2)

    out = pl.pallas_call(
        kernel,
        out_shape=jax.ShapeDtypeStruct((rows, cols), x.dtype),
        grid=grid,
        in_specs=in_specs,
        out_specs=pl.BlockSpec((tr, cols), lambda i: (i, 0)),
        compiler_params=pltpu.CompilerParams(dimension_semantics=("parallel",)),
    )(*args)
    return out.reshape(orig_shape)


# ----------------------------------------------------------------------------
# Module
# ----------------------------------------------------------------------------

class SublayerConnection:
    """x + dropout(sublayer(LayerNorm(x))), matching the PyTorch module."""

    def __init__(self, size, dropout, eps=1e-6):
        self.size = size
        self.p = float(dropout)
        self.eps = float(eps)
        self.a_2 = jnp.ones((size,), jnp.float32)   # LayerNorm scale
        self.b_2 = jnp.zeros((size,), jnp.float32)  # LayerNorm shift

    def __call__(self, x, sublayer, *, training=False, seed=0):
        normed = layer_norm(x, self.a_2, self.b_2, self.eps)
        # `sublayer` is an arbitrary user callable (e.g. attention/FFN);
        # it runs as plain JAX between the two Pallas kernels.
        _x = sublayer(normed)
        if isinstance(_x, tuple):
            main = residual_add_dropout(x, _x[0], self.p, training, seed)
            return (main, _x[1])
        return residual_add_dropout(x, _x, self.p, training, seed)


# ----------------------------------------------------------------------------
# Demo / correctness check
# ----------------------------------------------------------------------------

if __name__ == "__main__":
    B, S, D = 2, 8, 32
    dropout_p = 0.1

    key = jax.random.PRNGKey(0)
    kx, kw = jax.random.split(key)
    x = jax.random.normal(kx, (B, S, D), dtype=jnp.float32)
    w = jax.random.normal(kw, (D, D), dtype=jnp.float32) * 0.1

    def sublayer(h):
        return jnp.tanh(h @ w)

    module = SublayerConnection(size=D, dropout=dropout_p)

    # Eval-mode forward (dropout is identity, matching nn.Dropout.eval()).
    out = jax.block_until_ready(module(x, sublayer, training=False))

    # Pure-JAX reference with identical LayerNorm semantics (unbiased std, eps on std).
    def ref_norm(v):
        mean = v.mean(-1, keepdims=True)
        var = ((v - mean) ** 2).sum(-1, keepdims=True) / (v.shape[-1] - 1)
        std = jnp.sqrt(var)
        return module.a_2 * (v - mean) / (std + module.eps) + module.b_2

    ref = x + sublayer(ref_norm(x))
    assert jnp.allclose(out, ref, atol=1e-5, rtol=1e-5), "mismatch vs reference (eval path)"

    # Tuple-returning sublayer path (e.g. attention returning (out, weights)).
    out_tup = module(x, lambda h: (jnp.tanh(h @ w), jnp.float32(1.0)), training=False)
    jax.block_until_ready(out_tup[0])
    assert jnp.allclose(out_tup[0], ref, atol=1e-5, rtol=1e-5), "mismatch vs reference (tuple path)"

    # Training with p=0 must match the eval path exactly.
    module_p0 = SublayerConnection(size=D, dropout=0.0)
    out_p0 = jax.block_until_ready(module_p0(x, sublayer, training=True, seed=7))
    assert jnp.allclose(out_p0, ref, atol=1e-5, rtol=1e-5), "mismatch (training, p=0)"

    # Training-mode run with dropout active (keep-prob 1-p, 1/(1-p) rescale);
    # the RNG stream differs from torch's but the semantics match.
    out_tr = jax.block_until_ready(module(x, sublayer, training=True, seed=123))
    assert out_tr.shape == x.shape and bool(jnp.all(jnp.isfinite(out_tr)))

    print("KERNEL_OK")
</pallas_src>

<mosaic_0001>
module attributes {stable_mosaic.version = 11 : i64} {
  func.func @_layernorm_kernel(%arg0: i32, %arg1: memref<16x32xf32, #tpu.memory_space<vmem>>, %arg2: memref<1x32xf32, #tpu.memory_space<vmem>>, %arg3: memref<1x32xf32, #tpu.memory_space<vmem>>, %arg4: memref<16x32xf32, #tpu.memory_space<vmem>>) attributes {dimension_semantics = [#tpu.dimension_semantics<parallel>], iteration_bounds = array<i64: 1>, scalar_prefetch = 0 : i64, scratch_operands = 0 : i64, tpu.core_type = #tpu.core_type<tc>, window_params = [{transform_indices = @transform_0, window_bounds = array<i64: 16, 32>}, {pipeline_mode = #tpu.pipeline_mode<synchronous>, transform_indices = @transform_1, window_bounds = array<i64: 1, 32>}, {pipeline_mode = #tpu.pipeline_mode<synchronous>, transform_indices = @transform_2, window_bounds = array<i64: 1, 32>}, {transform_indices = @transform_3, window_bounds = array<i64: 16, 32>}]} {
    %c0 = arith.constant 0 : index
    %c0_0 = arith.constant 0 : index
    %0 = vector.load %arg1[%c0, %c0_0] : memref<16x32xf32, #tpu.memory_space<vmem>>, vector<16x32xf32>
    %cst = arith.constant dense<0.000000e+00> : vector<16xf32>
    %1 = vector.multi_reduction <add>, %0, %cst [1] : vector<16x32xf32> to vector<16xf32>
    %2 = vector.shape_cast %1 : vector<16xf32> to vector<16x1xf32>
    %cst_1 = arith.constant 3.200000e+01 : f32
    %3 = vector.broadcast %cst_1 : f32 to vector<16x1xf32>
    %4 = arith.divf %2, %3 : vector<16x1xf32>
    %5 = vector.broadcast %4 : vector<16x1xf32> to vector<16x32xf32>
    %6 = arith.subf %0, %5 : vector<16x32xf32>
    %7 = arith.mulf %6, %6 : vector<16x32xf32>
    %cst_2 = arith.constant dense<0.000000e+00> : vector<16xf32>
    %8 = vector.multi_reduction <add>, %7, %cst_2 [1] : vector<16x32xf32> to vector<16xf32>
    %9 = vector.shape_cast %8 : vector<16xf32> to vector<16x1xf32>
    %cst_3 = arith.constant 0.0322580636 : f32
    %10 = vector.broadcast %cst_3 : f32 to vector<16x1xf32>
    %11 = arith.mulf %9, %10 : vector<16x1xf32>
    %12 = math.sqrt %11 : vector<16x1xf32>
    %c0_4 = arith.constant 0 : index
    %c0_5 = arith.constant 0 : index
    %13 = vector.load %arg2[%c0_4, %c0_5] : memref<1x32xf32, #tpu.memory_space<vmem>>, vector<1x32xf32>
    %c0_6 = arith.constant 0 : index
    %c0_7 = arith.constant 0 : index
    %14 = vector.load %arg3[%c0_6, %c0_7] : memref<1x32xf32, #tpu.memory_space<vmem>>, vector<1x32xf32>
    %15 = vector.broadcast %13 : vector<1x32xf32> to vector<16x32xf32>
    %16 = arith.mulf %15, %6 : vector<16x32xf32>
    %cst_8 = arith.constant 9.99999997E-7 : f32
    %17 = vector.broadcast %cst_8 : f32 to vector<16x1xf32>
    %18 = arith.addf %12, %17 : vector<16x1xf32>
    %19 = vector.broadcast %18 : vector<16x1xf32> to vector<16x32xf32>
    %20 = arith.divf %16, %19 : vector<16x32xf32>
    %21 = vector.broadcast %14 : vector<1x32xf32> to vector<16x32xf32>
    %22 = arith.addf %20, %21 : vector<16x32xf32>
    %c0_9 = arith.constant 0 : index
    %c0_10 = arith.constant 0 : index
    %23 = vector.load %arg4[%c0_9, %c0_10] : memref<16x32xf32, #tpu.memory_space<vmem>>, vector<16x32xf32>
    tpu.vector_store %arg4[%c0_9, %c0_10], %22 {strides = array<i32>} : memref<16x32xf32, #tpu.memory_space<vmem>>, vector<16x32xf32>,
    return
  }
  func.func @transform_0(%arg0: i32) -> (i32, i32) {
    %c0_i32 = arith.constant 0 : i32
    %c0_i32_0 = arith.constant 0 : i32
    return %arg0, %c0_i32 : i32, i32
  }
  func.func @transform_1(%arg0: i32) -> (i32, i32) {
    %c0_i32 = arith.constant 0 : i32
    %c0_i32_0 = arith.constant 0 : i32
    %c0_i32_1 = arith.constant 0 : i32
    return %c0_i32, %c0_i32_0 : i32, i32
  }
  func.func @transform_2(%arg0: i32) -> (i32, i32) {
    %c0_i32 = arith.constant 0 : i32
    %c0_i32_0 = arith.constant 0 : i32
    %c0_i32_1 = arith.constant 0 : i32
    return %c0_i32, %c0_i32_0 : i32, i32
  }
  func.func @transform_3(%arg0: i32) -> (i32, i32) {
    %c0_i32 = arith.constant 0 : i32
    %c0_i32_0 = arith.constant 0 : i32
    return %arg0, %c0_i32 : i32, i32
  }
}

</mosaic_0001>

<bundles_post_ra>
// kernel: tpu_custom_call.1
= control target key start
LH: loop header
LB: loop body
LE: loop exit
PB: predicated region body
PF: predicated region fallthrough
CT: control target
= control target key end

     0   :  { %8 = vsyncpa [#allocation3], 0  ;;  %s216_s0 = inlined_call_operand.hbm [shape: f32[16,32], index: 0, kind: input, shape index: {}]   ;;  %s217_s1 = inlined_call_operand.vmem [shape: f32[1,32], index: 1, kind: input, shape index: {}]   ;;  %s218_s2 = inlined_call_operand.vmem [shape: f32[1,32], index: 2, kind: input, shape index: {}]   ;;  %s219_s3 = inlined_call_operand.hbm [shape: f32[16,32], index: 3, kind: output, shape index: {}]  }
   0x1   :  { %9 = vsyncpa [#allocation4], 0  ;;  %s168_s12 = smov [#allocation2]  }
   0x2   :  { %s15_s13 = sshll.u32 %s168_s12, 4  ;;  %s16_s13 = int_to_ptr.vmem [resolvable:$true] %s15_s13 }
   0x3   :  { %s132_s14 = scalar_lea.vmem %s16_s13, 256  ;;  %p137_p1 = scmp.lt.s32.totalorder %s16_s13, %s16_s13 }
   0x4   :  { %p133_p0 = scmp.ne.s32.totalorder %s16_s13, %s132_s14  ;;  %p138_p2 = scmp.lt.s32.totalorder %s132_s14, %s132_s14 }
   0x6   :  { %p139_p3 = por %p138_p2, %p137_p1 }
   0x8   :  { %p140_p4 = pnand %p139_p3, %p133_p0 }
   0xa   :  { %143 = shalt.err (!%p140_p4)
}
   0xb   :  { %s169_s15 = smov 128   ;;  %s170_s16 = smov 8  }
   0xc   :  { %21 = dma.hbm_to_vmem [thread:$0]  %s216_s0, 256, %s16_s13, [#allocation3], %s169_s15, %s169_s15, %s170_s16  }
   0xd   :  { %164 = dma.done.wait [#allocation3], 256  }
   0xe   :  { %165 = vsyncadd [#allocation3], 4294967040  ;;  %vm31_vm0 = vcmask 261120   ;;  %v29_v0 = vld [vmem:[#allocation2] sm:$0xff]  ;;  %v30_v1 = vld [vmem:[#allocation2 + $0x8] sm:$0xff]  ;;  %s171_s22 = smov [#allocation5]  }
   0xf   :  { %v32_v2 = vsel %vm31_vm0, %v29_v0, 0.0  ;;  %v35_v3 = vsel %vm31_vm0, %v30_v1, 0.0  ;;  %v110_v30 = vld [vmem:[%s217_s1] ss:$0 sm:$0xff]  ;;  %s98_s23 = sshll.u32 %s171_s22, 4  ;;  %s99_s23 = int_to_ptr.vmem [resolvable:$true] %s98_s23 }
  0x10   :  { %33 = vadd.xlane.f32.xlu0 %v32_v2  ;;  %v111_v33 = vld [vmem:[%s218_s2] ss:$0 sm:$0xff]  ;;  %s144_s1 = scalar_lea.vmem %s99_s23, 256  ;;  %p149_p6 = scmp.lt.s32.totalorder %s99_s23, %s99_s23 }
  0x11   :  { %p145_p5 = scmp.ne.s32.totalorder %s99_s23, %s144_s1  ;;  %p150_p7 = scmp.lt.s32.totalorder %s144_s1, %s144_s1 }
  0x13   :  { %p151_p8 = por %p150_p7, %p149_p6 }
  0x14   :  { %36 = vadd.xlane.f32.xlu0 %v35_v3 }
  0x15   :  { %p152_p9 = pnand %p151_p8, %p145_p5 }
  0x99   :  { %v34_v4 = vpop.xlane.xlu0 %33 }
  0x9a   :  { %v39_v5 = vmul.f32 0.03125, %v34_v4 }
  0x9c   :  { %v41_v6 = vsub.f32 %v29_v0, %v39_v5 }
  0x9d   :  { %v37_v7 = vpop.xlane.xlu0 %36 }
  0x9e   :  { %v40_v8 = vmul.f32 0.03125, %v37_v7  ;;  %v43_v9 = vmul.f32 %v41_v6, %v41_v6  ;;  %v75_v31 = vmul.f32 %v110_v30, %v41_v6 }
  0xa0   :  { %v42_v10 = vsub.f32 %v30_v1, %v40_v8  ;;  %v45_v11 = vsel %vm31_vm0, %v43_v9, 0.0 }
  0xa1   :  { %46 = vadd.xlane.f32.xlu1 %v45_v11 }
  0xa2   :  { %v44_v12 = vmul.f32 %v42_v10, %v42_v10  ;;  %v76_v35 = vmul.f32 %v110_v30, %v42_v10 }
  0xa4   :  { %v48_v13 = vsel %vm31_vm0, %v44_v12, 0.0 }
  0xa5   :  { %49 = vadd.xlane.f32.xlu1 %v48_v13 }
 0x12a   :  { %v47_v14 = vpop.xlane.xlu1 %46 }
 0x12b   :  { %v51_v15 = vmul.f32 0.032258064, %v47_v14 }
 0x12d   :  { %116 = vrsqrt.f32 %v51_v15  ;;  %vm55_vm1 = vcmp.eq.f32.partialorder %v51_v15, inf  ;;  %v58_v20 = vand.u32 2147483648, %v51_v15  ;;  %vm57_vm2 = vcmp.eq.f32.partialorder %v51_v15, 0.0 }
 0x12e   :  { %v50_v16 = vpop.xlane.xlu1 %49 }
 0x12f   :  { %v52_v17 = vmul.f32 0.032258064, %v50_v16 }
 0x131   :  { %118 = vrsqrt.f32 %v52_v17  ;;  %vm62_vm3 = vcmp.eq.f32.partialorder %v52_v17, inf  ;;  %v65_v26 = vand.u32 2147483648, %v52_v17  ;;  %vm64_vm4 = vcmp.eq.f32.partialorder %v52_v17, 0.0 }
 0x13a   :  { %v117_v18 = vpop.eup %116 }
 0x13b   :  { %v54_v19 = vmul.f32 %v117_v18, %v51_v15 }
 0x13d   :  { %v56_v21 = vsel %vm55_vm1, %v51_v15, %v54_v19 }
 0x13e   :  { %v119_v22 = vpop.eup %118  ;;  %v59_v23 = vsel %vm57_vm2, %v58_v20, %v56_v21 }
 0x13f   :  { %v77_v24 = vadd.f32 1e-06, %v59_v23  ;;  %v61_v25 = vmul.f32 %v119_v22, %v52_v17 }
 0x141   :  { %120 = vrcp.f32 %v77_v24  ;;  %v63_v27 = vsel %vm62_vm3, %v52_v17, %v61_v25 }
 0x142   :  { %v66_v28 = vsel %vm64_vm4, %v65_v26, %v63_v27 }
 0x143   :  { %v78_v29 = vadd.f32 1e-06, %v66_v28 }
 0x145   :  { %122 = vrcp.f32 %v78_v29 }
 0x14e   :  { %v121_v32 = vpop.eup %120 }
 0x14f   :  { %v80_v34 = vmul.f32 %v121_v32, %v75_v31 }
 0x151   :  { %v89_v36 = vadd.f32 %v111_v33, %v80_v34 }
 0x152   :  { %v123_v37 = vpop.eup %122 }
 0x153   :  { %v82_v38 = vmul.f32 %v123_v37, %v76_v35  ;;  %91 = vst.msk [vmem:[#allocation5] sm:$0xff] %vm31_vm0, %v89_v36 }
 0x155   :  { %v90_v39 = vadd.f32 %v111_v33, %v82_v38 }
 0x157   :  { %92 = vst.msk [vmem:[#allocation5 + $0x8] sm:$0xff] %vm31_vm0, %v90_v39 }
 0x158   :  { %155 = shalt.err (!%p152_p9)
}
 0x159   :  { %104 = dma.vmem_to_hbm [thread:$0]  %s99_s23, 256, %s219_s3, [#allocation4], %s169_s15, %s169_s15, %s170_s16  }
 0x15a   :  { %166 = dma.done.wait [#allocation4], 256  }
 0x15b   :  { %167 = vsyncadd [#allocation4], 4294967040 }
 0x15c   :  { %108 = vsyncpa [#allocation3], 1 }
 0x15d   :  { %109 = vsyncpa [#allocation4], 1 }

</bundles_post_ra>
